<compile_context>
chip_gen: v7x
topology: tpu7x:2x2x1
jax: 0.10.0
libtpu: 0.0.40
codegen_flags: <defaults>
</compile_context>

<pallas_src>
import jax
import jax.numpy as jnp
from jax.experimental import pallas as pl

_OUT_LANES = 128  # lane-dense output row; scalar result is broadcast across it


def _awl_kernel(data_ref, out_ref):
    # data_ref: (2, num) f32 in VMEM. Row 0 = losses, row 1 = params.
    # out_ref:  (1, _OUT_LANES) f32 in VMEM; result broadcast across the row.
    data = data_ref[...]
    l = data[0:1, :]          # (1, num)
    p = data[1:2, :]          # (1, num)
    p2 = p * p
    # 0.5 / p^2 * loss + log(1 + p^2); reciprocal + log1p use the EUP slot.
    terms = 0.5 * l * pl.reciprocal(p2) + jnp.log1p(p2)
    s = jnp.sum(terms, axis=1, keepdims=True)          # (1, 1)
    out_ref[...] = jnp.broadcast_to(s, (1, _OUT_LANES)).astype(out_ref.dtype)


@jax.jit
def automatic_weighted_loss(losses, params):
    """losses: (num,) per-task loss values; params: (num,) learned weights.

    Returns a scalar f32:
        sum_i 0.5 / params[i]**2 * losses[i] + log(1 + params[i]**2)
    """
    num = losses.shape[0]
    # Single packed input -> one DMA (instead of two tiny ones).
    data = jnp.stack(
        [losses.astype(jnp.float32), params.astype(jnp.float32)], axis=0
    )  # (2, num)

    cost = pl.CostEstimate(
        flops=6 * num,                       # mul/mul/mul/add + reduction
        transcendentals=2 * num,             # reciprocal + log1p per task
        bytes_accessed=2 * num * 4 + _OUT_LANES * 4,
    )

    out = pl.pallas_call(
        _awl_kernel,
        out_shape=jax.ShapeDtypeStruct((1, _OUT_LANES), jnp.float32),
        in_specs=[pl.BlockSpec((2, num), lambda: (0, 0))],
        out_specs=pl.BlockSpec((1, _OUT_LANES), lambda: (0, 0)),
        cost_estimate=cost,
    )(data)
    # Slice fuses into the jitted wrapper (no standalone gather op).
    return out[0, 0]


if __name__ == "__main__":
    num = 2  # AutomaticWeightedLoss(num=2)

    # Deterministic parameter init, matching torch.ones(num).
    params = jnp.ones((num,), dtype=jnp.float32)

    # Deterministic example multi-task loss values, built in-script.
    key = jax.random.PRNGKey(0)
    losses = jnp.abs(jax.random.normal(key, (num,), dtype=jnp.float32)) + 0.5

    result = automatic_weighted_loss(losses, params)
    result = jax.block_until_ready(result)

    # Pure-JAX reference check of the forward semantics (PyTorch formula).
    ref = jnp.sum(0.5 / params**2 * losses + jnp.log(1.0 + params**2))
    assert jnp.allclose(result, ref, rtol=1e-6, atol=1e-6), (result, ref)

    print("KERNEL_OK")
</pallas_src>

<mosaic_0001>
module attributes {stable_mosaic.version = 11 : i64} {
  func.func @_awl_kernel(%arg0: memref<2x2xf32, #tpu.memory_space<vmem>>, %arg1: memref<1x128xf32, #tpu.memory_space<vmem>>) attributes {dimension_semantics = [], scalar_prefetch = 0 : i64, scratch_operands = 0 : i64, tpu.core_type = #tpu.core_type<tc>} {
    %c0 = arith.constant 0 : index
    %c0_0 = arith.constant 0 : index
    %0 = vector.load %arg0[%c0, %c0_0] : memref<2x2xf32, #tpu.memory_space<vmem>>, vector<2x2xf32>
    %1 = vector.extract_strided_slice %0 {offsets = [0, 0], sizes = [1, 2], strides = [1, 1]} : vector<2x2xf32> to vector<1x2xf32>
    %2 = vector.extract_strided_slice %0 {offsets = [1, 0], sizes = [1, 2], strides = [1, 1]} : vector<2x2xf32> to vector<1x2xf32>
    %3 = arith.mulf %2, %2 : vector<1x2xf32>
    %cst = arith.constant 5.000000e-01 : f32
    %4 = vector.broadcast %cst : f32 to vector<1x2xf32>
    %5 = arith.mulf %4, %1 : vector<1x2xf32>
    %6 = tpu.reciprocal %3 : vector<1x2xf32> -> vector<1x2xf32>
    %7 = arith.mulf %5, %6 : vector<1x2xf32>
    %8 = math.log1p %3 : vector<1x2xf32>
    %9 = arith.addf %7, %8 : vector<1x2xf32>
    %cst_1 = arith.constant dense<0.000000e+00> : vector<1xf32>
    %10 = vector.multi_reduction <add>, %9, %cst_1 [1] : vector<1x2xf32> to vector<1xf32>
    %11 = vector.shape_cast %10 : vector<1xf32> to vector<1x1xf32>
    %12 = vector.shape_cast %11 : vector<1x1xf32> to vector<1x1xf32>
    %13 = vector.broadcast %12 : vector<1x1xf32> to vector<1x128xf32>
    %c0_2 = arith.constant 0 : index
    %c0_3 = arith.constant 0 : index
    %14 = vector.load %arg1[%c0_2, %c0_3] : memref<1x128xf32, #tpu.memory_space<vmem>>, vector<1x128xf32>
    tpu.vector_store %arg1[%c0_2, %c0_3], %13 {strides = array<i32>} : memref<1x128xf32, #tpu.memory_space<vmem>>, vector<1x128xf32>,
    return
  }
}

</mosaic_0001>

<bundles_post_ra>
// kernel: automatic_weighted_loss.1
= control target key start
LH: loop header
LB: loop body
LE: loop exit
PB: predicated region body
PF: predicated region fallthrough
CT: control target
= control target key end

     0   :  { %s104_s0 = inlined_call_operand.vmem [shape: f32[2,2], index: 0, kind: input, shape index: {}]   ;;  %s105_s1 = inlined_call_operand.hbm [shape: f32[1,128], index: 1, kind: output, shape index: {}]  }
   0x1   :  { %v9_v0 = vld [vmem:[%s104_s0] sm:$0x3] }
   0x2   :  { %6 = vsyncpa [#allocation3], 0  ;;  %v10_v1 = vmul.f32 %v9_v0, %v9_v0  ;;  %v11_v7 = vmul.f32 0.5, %v9_v0  ;;  %vm30_vm1 = vcmask 8192   ;;  %s78_s0 = smov [#allocation2]  }
   0x3   :  { %s41_s8 = sshll.u32 %s78_s0, 4  ;;  %s42_s8 = int_to_ptr.vmem [resolvable:$true] %s41_s8 }
   0x4   :  { %50 = vrcp.f32 %v10_v1  ;;  %v17_v2 = vadd.f32 1.0, %v10_v1  ;;  %v20_v3 = vmul.f32 -0.5, %v10_v1  ;;  %v23_v5 = vand.u32 2147483647, %v10_v1  ;;  %s54_s9 = scalar_lea.vmem %s42_s8, 16  ;;  %s58_s10 = scalar_lea.vmem %s42_s8, 32 }
   0x5   :  { %p55_p0 = scmp.ne.s32.totalorder %s42_s8, %s54_s9  ;;  %p59_p1 = scmp.lt.s32.totalorder %s42_s8, %s42_s8 }
   0x6   :  { %52 = vlog2.f32 %v17_v2  ;;  %v21_v4 = vadd.f32 1.0, %v20_v3  ;;  %vm24_vm0 = vcmp.lt.f32.partialorder %v23_v5, 0.0004427343  ;;  %p60_p2 = scmp.lt.s32.totalorder %s58_s10, %s54_s9 }
   0x8   :  { %v22_v9 = vmul.f32 %v21_v4, %v10_v1  ;;  %p61_p3 = por %p60_p2, %p59_p1 }
   0xa   :  { %p62_p4 = pnand %p61_p3, %p55_p0 }
   0xe   :  { %v51_v6 = vpop.eup %50 }
   0xf   :  { %v14_v8 = vrot.slane %v51_v6, 1 }
  0x10   :  { %v53_v10 = vpop.eup %52 }
  0x11   :  { %v19_v11 = vmul.f32 0.6931472, %v53_v10  ;;  %v16_v12 = vmul.f32 %v14_v8, %v11_v7 }
  0x13   :  { %v25_v13 = vsel %vm24_vm0, %v22_v9, %v19_v11 }
  0x14   :  { %v27_v14 = vrot.slane %v25_v13, 1 }
  0x16   :  { %v29_v15 = vadd.f32 %v27_v14, %v16_v12 }
  0x18   :  { %v31_v16 = vsel %vm30_vm1, %v29_v15, 0.0 }
  0x19   :  { %32 = vadd.xlane.f32.xlu0 %v31_v16 }
  0xa6   :  { %v33_v17 = vpop.xlane.xlu0 %32 }
  0xa7   :  { %34 = vst [vmem:[#allocation2] sm:$0x1] %v33_v17 }
  0xa8   :  { %65 = shalt.err (!%p62_p4)
}
  0xa9   :  { %s66_s13 = scalar_lea.hbm %s105_s1, 16 }
  0xaa   :  { %p67_p5 = scmp.ne.s32.totalorder %s105_s1, %s66_s13  ;;  %p70_p6 = scmp.lt.u32.totalorder %s66_s13, %s105_s1 }
  0xac   :  { %p72_p7 = pnand %p70_p6, %p67_p5 }
  0xae   :  { %75 = shalt.err (!%p72_p7)
}
  0xaf   :  { %44 = dma.vmem_to_hbm [thread:$0]  %s42_s8, 16, %s105_s1, [#allocation3]  }
  0xb0   :  { %76 = dma.done.wait [#allocation3], 16  }
  0xb1   :  { %77 = vsyncadd [#allocation3], 4294967280 }
  0xb2   :  { %48 = vsyncpa [#allocation3], 1 }

</bundles_post_ra>
